<compile_context>
chip_gen: v7x
topology: tpu7x:2x2x1
jax: 0.10.0
libtpu: 0.0.40
codegen_flags: <defaults>
</compile_context>

<pallas_src>
import functools
import math

import jax
import jax.numpy as jnp
from jax import lax
from jax.experimental import pallas as pl
from jax.experimental.pallas import tpu as pltpu

EMBED_DIM = 32
NUM_HEADS = 4
HEAD_DIM = EMBED_DIM // NUM_HEADS
LN_EPS = 1e-5          # matches torch.nn.LayerNorm default


def _layernorm(z, gamma, beta):
    mu = jnp.mean(z, axis=-1, keepdims=True)
    var = jnp.mean((z - mu) ** 2, axis=-1, keepdims=True)
    return (z - mu) * lax.rsqrt(var + LN_EPS) * gamma + beta


def connected_kernel(x_ref, wqkv_ref, w2_ref, bq_ref, vec_ref, o_ref, *, batch):
    N, E = x_ref.shape                     # N = S * batch token rows (batch-minor)
    H, Dh = NUM_HEADS, HEAD_DIM
    G = 3 * H

    x = x_ref[...]                         # (N, E) f32
    vec = vec_ref[...]                     # (6, E) f32 packed bias / LN rows

    # --- fused per-head QKV projection (no (N,H,Dh)->(H,N,Dh) relayout) ------
    xg = jnp.broadcast_to(x.astype(jnp.bfloat16), (G, N, E))   # cheap vreg copies
    qkv = jnp.einsum('gne,ged->gnd', xg, wqkv_ref[...],
                     preferred_element_type=jnp.float32)       # (3H, N, Dh) f32
    q = qkv[0:H] + bq_ref[...]      # q bias pre-scaled by 1/sqrt(Dh); (H, N, Dh)
    k = qkv[H:2 * H]                # k bias dropped: row-constant logit shift
    v = qkv[2 * H:3 * H]            # v bias folded into out-proj bias (pack time)

    # --- head-batched attention over the whole (S*B) token slab --------------
    s = jnp.einsum('hqd,hkd->hqk',
                   q.astype(jnp.bfloat16), k.astype(jnp.bfloat16),
                   preferred_element_type=jnp.float32)          # (H, N, N) f32

    # Static same-batch mask: row n belongs to batch (n % batch); only
    # same-batch query/key pairs may attend (== per-batch attention).
    rows = lax.broadcasted_iota(jnp.int32, (N, N), 0)
    cols = lax.broadcasted_iota(jnp.int32, (N, N), 1)
    if (batch & (batch - 1)) == 0:                      # power-of-two batch
        same = ((rows ^ cols) & (batch - 1)) == 0
    else:
        same = (rows % batch) == (cols % batch)
    s = s + jnp.where(same, 0.0, -1e30).astype(jnp.float32)

    # TODO(synk): attention dropout (p=0.1) omitted — eval()/inference semantics.
    m = jnp.max(s, axis=-1, keepdims=True)
    p = jnp.exp(s - m)
    denom = jnp.sum(p, axis=-1, keepdims=True)
    p = p * pl.reciprocal(denom, approx=True)           # EUP reciprocal, no VALU div

    attn = jnp.einsum('hqk,hkd->hqd',
                      p.astype(jnp.bfloat16), v.astype(jnp.bfloat16),
                      preferred_element_type=jnp.float32)       # (H, N, Dh) f32

    # --- head-fused output projection: sum_h attn_h @ Wout_h -----------------
    # w2 plane 0 is out_proj_w.T (E, E), f32 so the (H, Dh, E) split is a free
    # sublane-tile-aligned reshape; cast to bf16 for the MXU afterwards.
    w_out_h = w2_ref[0].reshape(H, Dh, E).astype(jnp.bfloat16)  # (H, Dh, E)
    o_h = jnp.einsum('hnd,hde->hne', attn.astype(jnp.bfloat16), w_out_h,
                     preferred_element_type=jnp.float32)        # (H, N, E)
    a_out = jnp.sum(o_h, axis=0) + vec[0:1]   # effective out-proj bias (+v bias)

    # --- residual + LN1, FFN, residual + LN2 ---------------------------------
    y = _layernorm(x + a_out, vec[1:2], vec[2:3])
    ffn_w = w2_ref[1].astype(jnp.bfloat16)                      # (E, E)
    f = jnp.dot(y.astype(jnp.bfloat16), ffn_w,
                preferred_element_type=jnp.float32) + vec[3:4]
    o_ref[...] = _layernorm(y + f, vec[4:5], vec[5:6])


def connected_layer_forward(image_features, text_features, kparams):
    """image_features: (L_img, B, E); text_features: (L_txt, B, E) — seq-first,
    matching the PyTorch nn.MultiheadAttention convention."""
    x = jnp.concatenate([image_features, text_features], axis=0)   # (S, B, E)
    S, B, E = x.shape
    N = S * B
    H, Dh = NUM_HEADS, HEAD_DIM
    x2 = x.reshape(N, E).astype(jnp.float32)    # free row-major reshape

    # Advisory cost hint so XLA overlaps surrounding HLO with this tiny call.
    flops = 2 * N * E * 3 * E + 4 * H * N * N * Dh + 4 * N * E * E
    bytes_accessed = (N * E * 4                 # x
                      + 3 * H * E * Dh * 2      # w_qkv (bf16)
                      + 2 * E * E * 4           # w2 (f32)
                      + H * Dh * 4              # bq_h
                      + 6 * E * 4               # vec
                      + N * E * 4)              # output
    cost = pl.CostEstimate(flops=int(flops),
                           transcendentals=int(H * N * N + 2 * N),
                           bytes_accessed=int(bytes_accessed))

    def full(shape):
        return pl.BlockSpec(shape, lambda i, _n=len(shape): (0,) * _n)

    out2 = pl.pallas_call(
        functools.partial(connected_kernel, batch=B),
        out_shape=jax.ShapeDtypeStruct((N, E), jnp.float32),
        grid=(1,),
        in_specs=[
            full((N, E)),                  # token slab
            full((3 * H, E, Dh)),          # per-head QKV weights (bf16, q scaled)
            full((2, E, E)),               # [out_proj_w.T, ffn_w.T] (f32)
            full((H, 1, Dh)),              # head-shaped, scaled q bias
            full((6, E)),                  # packed biases + LayerNorm params
        ],
        out_specs=full((N, E)),
        compiler_params=pltpu.CompilerParams(
            dimension_semantics=("arbitrary",)),
        cost_estimate=cost,
    )(x2, kparams["w_qkv"], kparams["w2"], kparams["bq_h"], kparams["vec"])

    out = out2.reshape(S, B, E)            # free reshape back to seq-first
    # Matches the PyTorch module exactly: concated[0].unsqueeze(0) / concated[1:]
    return out[0:1], out[1:]


def init_params(key, embed_dim=EMBED_DIM):
    """Parameters in the PyTorch module's native shapes."""
    E = embed_dim
    ks = jax.random.split(key, 5)
    lim = 1.0 / math.sqrt(E)
    return {
        "in_proj_w": jax.random.uniform(ks[0], (3 * E, E), jnp.float32, -lim, lim),
        "in_proj_b": jax.random.uniform(ks[1], (3 * E,), jnp.float32, -lim, lim),
        "out_proj_w": jax.random.uniform(ks[2], (E, E), jnp.float32, -lim, lim),
        "out_proj_b": jnp.zeros((E,), jnp.float32),
        "ln1_g": jnp.ones((E,), jnp.float32),
        "ln1_b": jnp.zeros((E,), jnp.float32),
        "ffn_w": jax.random.uniform(ks[3], (E, E), jnp.float32, -lim, lim),
        "ffn_b": jax.random.uniform(ks[4], (E,), jnp.float32, -lim, lim),
        "ln2_g": jnp.ones((E,), jnp.float32),
        "ln2_b": jnp.zeros((E,), jnp.float32),
    }


def pack_params(p):
    """One-time transform to kernel layout: per-head reshaped weights (bf16),
    1/sqrt(Dh) folded into W_q/b_q, k-bias dropped (cancels in softmax),
    v-bias folded into the effective out-proj bias, small vectors packed."""
    E, H, Dh = EMBED_DIM, NUM_HEADS, HEAD_DIM
    scale = 1.0 / math.sqrt(Dh)

    w_in = jnp.asarray(p["in_proj_w"], jnp.float32)          # (3E, E) torch layout
    b_in = jnp.asarray(p["in_proj_b"], jnp.float32)          # (3E,)
    wq, wk, wv = w_in[:E], w_in[E:2 * E], w_in[2 * E:]
    bq, bv = b_in[:E], b_in[2 * E:]                          # bk intentionally unused

    def head(w):  # torch (E_out, E_in) -> x @ W.T per head: (H, E_in, Dh)
        return jnp.transpose(w.T.reshape(E, H, Dh), (1, 0, 2))

    w_qkv = jnp.concatenate([head(wq) * scale, head(wk), head(wv)], axis=0)
    w_qkv = w_qkv.astype(jnp.bfloat16)                       # (3H, E, Dh)
    bq_h = (bq * scale).reshape(H, 1, Dh).astype(jnp.float32)

    out_w_t = jnp.asarray(p["out_proj_w"], jnp.float32).T    # (E, E)
    ffn_w_t = jnp.asarray(p["ffn_w"], jnp.float32).T         # (E, E)
    w2 = jnp.stack([out_w_t, ffn_w_t], axis=0).astype(jnp.float32)   # (2, E, E)

    # v-bias folded through out_proj (softmax rows sum to 1 -> exact up to the
    # approx-reciprocal epsilon); k-bias dropped (exactly cancels in softmax).
    out_b_eff = jnp.asarray(p["out_proj_b"], jnp.float32) + bv @ out_w_t

    vec = jnp.stack([
        out_b_eff,              # 0: effective out_proj bias
        p["ln1_g"],             # 1
        p["ln1_b"],             # 2
        p["ffn_b"],             # 3
        p["ln2_g"],             # 4
        p["ln2_b"],             # 5
    ], axis=0).astype(jnp.float32)                           # (6, E)

    return {"w_qkv": w_qkv, "w2": w2, "bq_h": bq_h, "vec": vec}


if __name__ == "__main__":
    key = jax.random.PRNGKey(0)
    k_img, k_txt, k_par = jax.random.split(key, 3)

    B = 2           # batch
    L_IMG = 1       # image token (module semantics assume a single image row)
    L_TXT = 8       # text tokens
    E = EMBED_DIM

    image_features = jax.random.normal(k_img, (L_IMG, B, E), jnp.float32)
    text_features = jax.random.normal(k_txt, (L_TXT, B, E), jnp.float32)
    kparams = pack_params(init_params(k_par))

    img_out, txt_out = connected_layer_forward(image_features, text_features,
                                               kparams)
    jax.block_until_ready((img_out, txt_out))
    assert img_out.shape == (1, B, E)
    assert txt_out.shape == (L_IMG + L_TXT - 1, B, E)
    print("KERNEL_OK")
</pallas_src>

<mosaic_0001>
module attributes {stable_mosaic.version = 11 : i64} {
  func.func @connected_kernel(%arg0: i32, %arg1: memref<18x32xf32, #tpu.memory_space<vmem>>, %arg2: memref<12x32x8xbf16, #tpu.memory_space<vmem>>, %arg3: memref<2x32x32xf32, #tpu.memory_space<vmem>>, %arg4: memref<4x1x8xf32, #tpu.memory_space<vmem>>, %arg5: memref<6x32xf32, #tpu.memory_space<vmem>>, %arg6: memref<18x32xf32, #tpu.memory_space<vmem>>) attributes {dimension_semantics = [#tpu.dimension_semantics<arbitrary>], iteration_bounds = array<i64: 1>, scalar_prefetch = 0 : i64, scratch_operands = 0 : i64, tpu.core_type = #tpu.core_type<tc>, window_params = [{pipeline_mode = #tpu.pipeline_mode<synchronous>, transform_indices = @transform_0, window_bounds = array<i64: 18, 32>}, {pipeline_mode = #tpu.pipeline_mode<synchronous>, transform_indices = @transform_1, window_bounds = array<i64: 12, 32, 8>}, {pipeline_mode = #tpu.pipeline_mode<synchronous>, transform_indices = @transform_2, window_bounds = array<i64: 2, 32, 32>}, {pipeline_mode = #tpu.pipeline_mode<synchronous>, transform_indices = @transform_3, window_bounds = array<i64: 4, 1, 8>}, {pipeline_mode = #tpu.pipeline_mode<synchronous>, transform_indices = @transform_4, window_bounds = array<i64: 6, 32>}, {pipeline_mode = #tpu.pipeline_mode<synchronous>, transform_indices = @transform_5, window_bounds = array<i64: 18, 32>}]} {
    %c0 = arith.constant 0 : index
    %c0_0 = arith.constant 0 : index
    %0 = vector.load %arg1[%c0, %c0_0] : memref<18x32xf32, #tpu.memory_space<vmem>>, vector<18x32xf32>
    %c0_1 = arith.constant 0 : index
    %c0_2 = arith.constant 0 : index
    %1 = vector.load %arg5[%c0_1, %c0_2] : memref<6x32xf32, #tpu.memory_space<vmem>>, vector<6x32xf32>
    %2 = arith.truncf %0 : vector<18x32xf32> to vector<18x32xbf16>
    %3 = vector.shape_cast %2 : vector<18x32xbf16> to vector<1x18x32xbf16>
    %4 = vector.broadcast %3 : vector<1x18x32xbf16> to vector<12x18x32xbf16>
    %c0_3 = arith.constant 0 : index
    %c0_4 = arith.constant 0 : index
    %c0_5 = arith.constant 0 : index
    %5 = vector.load %arg2[%c0_3, %c0_4, %c0_5] : memref<12x32x8xbf16, #tpu.memory_space<vmem>>, vector<12x32x8xbf16>
    "tpu.trace_start"() <{level = 10 : i32, message = "gne,ged->gnd"}> : () -> ()
    %cst = arith.constant dense<0.000000e+00> : vector<12x18x8xf32>
    %6 = tpu.matmul %4, %5, %cst {dimension_numbers = #tpu.dot_dimension_numbers<[2], [1], [1], [2], [0, 0, 0, 1, 1, 2], [0], [0]>} : vector<12x18x32xbf16>, vector<12x32x8xbf16>, vector<12x18x8xf32> -> vector<12x18x8xf32>
    "tpu.trace_stop"() : () -> ()
    %7 = vector.extract_strided_slice %6 {offsets = [0, 0, 0], sizes = [4, 18, 8], strides = [1, 1, 1]} : vector<12x18x8xf32> to vector<4x18x8xf32>
    %c0_6 = arith.constant 0 : index
    %c0_7 = arith.constant 0 : index
    %c0_8 = arith.constant 0 : index
    %8 = vector.load %arg4[%c0_6, %c0_7, %c0_8] : memref<4x1x8xf32, #tpu.memory_space<vmem>>, vector<4x1x8xf32>
    %9 = vector.broadcast %8 : vector<4x1x8xf32> to vector<4x18x8xf32>
    %10 = arith.addf %7, %9 : vector<4x18x8xf32>
    %11 = vector.extract_strided_slice %6 {offsets = [4, 0, 0], sizes = [4, 18, 8], strides = [1, 1, 1]} : vector<12x18x8xf32> to vector<4x18x8xf32>
    %12 = vector.extract_strided_slice %6 {offsets = [8, 0, 0], sizes = [4, 18, 8], strides = [1, 1, 1]} : vector<12x18x8xf32> to vector<4x18x8xf32>
    %13 = arith.truncf %10 : vector<4x18x8xf32> to vector<4x18x8xbf16>
    %14 = arith.truncf %11 : vector<4x18x8xf32> to vector<4x18x8xbf16>
    "tpu.trace_start"() <{level = 10 : i32, message = "hqd,hkd->hqk"}> : () -> ()
    %cst_9 = arith.constant dense<0.000000e+00> : vector<4x18x18xf32>
    %15 = tpu.matmul %13, %14, %cst_9 {dimension_numbers = #tpu.dot_dimension_numbers<[2], [2], [1], [1], [0, 0, 0, 1, 1, 1], [0], [0]>} : vector<4x18x8xbf16>, vector<4x18x8xbf16>, vector<4x18x18xf32> -> vector<4x18x18xf32>
    "tpu.trace_stop"() : () -> ()
    %16 = tpu.iota {dimensions = array<i32: 0>} : vector<18x18xi32>
    %17 = tpu.iota {dimensions = array<i32: 1>} : vector<18x18xi32>
    %18 = arith.xori %16, %17 : vector<18x18xi32>
    %c1_i32 = arith.constant 1 : i32
    %19 = vector.broadcast %c1_i32 : i32 to vector<18x18xi32>
    %20 = arith.andi %18, %19 : vector<18x18xi32>
    %c0_i32 = arith.constant 0 : i32
    %21 = vector.broadcast %c0_i32 : i32 to vector<18x18xi32>
    %22 = arith.cmpi eq, %20, %21 : vector<18x18xi32>
    %cst_10 = arith.constant 0.000000e+00 : f32
    %cst_11 = arith.constant -1.000000e+30 : f32
    %23 = vector.broadcast %cst_10 : f32 to vector<18x18xf32>
    %24 = vector.broadcast %cst_11 : f32 to vector<18x18xf32>
    %25 = arith.select %22, %23, %24 : vector<18x18xi1>, vector<18x18xf32>
    %26 = vector.shape_cast %25 : vector<18x18xf32> to vector<1x18x18xf32>
    %27 = vector.broadcast %26 : vector<1x18x18xf32> to vector<4x18x18xf32>
    %28 = arith.addf %15, %27 : vector<4x18x18xf32>
    %cst_12 = arith.constant dense<0xFF800000> : vector<4x18xf32>
    %29 = vector.multi_reduction <maximumf>, %28, %cst_12 [2] : vector<4x18x18xf32> to vector<4x18xf32>
    %30 = vector.shape_cast %29 : vector<4x18xf32> to vector<4x18x1xf32>
    %31 = vector.broadcast %30 : vector<4x18x1xf32> to vector<4x18x18xf32>
    %32 = arith.subf %28, %31 : vector<4x18x18xf32>
    %33 = math.exp %32 : vector<4x18x18xf32>
    %cst_13 = arith.constant dense<0.000000e+00> : vector<4x18xf32>
    %34 = vector.multi_reduction <add>, %33, %cst_13 [2] : vector<4x18x18xf32> to vector<4x18xf32>
    %35 = vector.shape_cast %34 : vector<4x18xf32> to vector<4x18x1xf32>
    %36 = tpu.reciprocal %35 {approx = true} : vector<4x18x1xf32> -> vector<4x18x1xf32>
    %37 = vector.broadcast %36 : vector<4x18x1xf32> to vector<4x18x18xf32>
    %38 = arith.mulf %33, %37 : vector<4x18x18xf32>
    %39 = arith.truncf %38 : vector<4x18x18xf32> to vector<4x18x18xbf16>
    %40 = arith.truncf %12 : vector<4x18x8xf32> to vector<4x18x8xbf16>
    "tpu.trace_start"() <{level = 10 : i32, message = "hqk,hkd->hqd"}> : () -> ()
    %cst_14 = arith.constant dense<0.000000e+00> : vector<4x18x8xf32>
    %41 = tpu.matmul %39, %40, %cst_14 {dimension_numbers = #tpu.dot_dimension_numbers<[2], [1], [1], [2], [0, 0, 0, 1, 1, 2], [0], [0]>} : vector<4x18x18xbf16>, vector<4x18x8xbf16>, vector<4x18x8xf32> -> vector<4x18x8xf32>
    "tpu.trace_stop"() : () -> ()
    %c0_15 = arith.constant 0 : index
    %c0_16 = arith.constant 0 : index
    %c0_17 = arith.constant 0 : index
    %42 = vector.load %arg3[%c0_15, %c0_16, %c0_17] : memref<2x32x32xf32, #tpu.memory_space<vmem>>, vector<1x32x32xf32>
    %43 = vector.shape_cast %42 : vector<1x32x32xf32> to vector<32x32xf32>
    %44 = vector.shape_cast %43 : vector<32x32xf32> to vector<4x8x32xf32>
    %45 = arith.truncf %44 : vector<4x8x32xf32> to vector<4x8x32xbf16>
    %46 = arith.truncf %41 : vector<4x18x8xf32> to vector<4x18x8xbf16>
    "tpu.trace_start"() <{level = 10 : i32, message = "hnd,hde->hne"}> : () -> ()
    %cst_18 = arith.constant dense<0.000000e+00> : vector<4x18x32xf32>
    %47 = tpu.matmul %46, %45, %cst_18 {dimension_numbers = #tpu.dot_dimension_numbers<[2], [1], [1], [2], [0, 0, 0, 1, 1, 2], [0], [0]>} : vector<4x18x8xbf16>, vector<4x8x32xbf16>, vector<4x18x32xf32> -> vector<4x18x32xf32>
    "tpu.trace_stop"() : () -> ()
    %cst_19 = arith.constant dense<0.000000e+00> : vector<18x32xf32>
    %48 = vector.multi_reduction <add>, %47, %cst_19 [0] : vector<4x18x32xf32> to vector<18x32xf32>
    %49 = vector.extract_strided_slice %1 {offsets = [0, 0], sizes = [1, 32], strides = [1, 1]} : vector<6x32xf32> to vector<1x32xf32>
    %50 = vector.broadcast %49 : vector<1x32xf32> to vector<18x32xf32>
    %51 = arith.addf %48, %50 : vector<18x32xf32>
    %52 = arith.addf %0, %51 : vector<18x32xf32>
    %53 = vector.extract_strided_slice %1 {offsets = [1, 0], sizes = [1, 32], strides = [1, 1]} : vector<6x32xf32> to vector<1x32xf32>
    %54 = vector.extract_strided_slice %1 {offsets = [2, 0], sizes = [1, 32], strides = [1, 1]} : vector<6x32xf32> to vector<1x32xf32>
    %cst_20 = arith.constant dense<0.000000e+00> : vector<18xf32>
    %55 = vector.multi_reduction <add>, %52, %cst_20 [1] : vector<18x32xf32> to vector<18xf32>
    %56 = vector.shape_cast %55 : vector<18xf32> to vector<18x1xf32>
    %cst_21 = arith.constant 3.200000e+01 : f32
    %57 = vector.broadcast %cst_21 : f32 to vector<18x1xf32>
    %58 = arith.divf %56, %57 : vector<18x1xf32>
    %59 = vector.broadcast %58 : vector<18x1xf32> to vector<18x32xf32>
    %60 = arith.subf %52, %59 : vector<18x32xf32>
    %61 = arith.mulf %60, %60 : vector<18x32xf32>
    %cst_22 = arith.constant dense<0.000000e+00> : vector<18xf32>
    %62 = vector.multi_reduction <add>, %61, %cst_22 [1] : vector<18x32xf32> to vector<18xf32>
    %63 = vector.shape_cast %62 : vector<18xf32> to vector<18x1xf32>
    %cst_23 = arith.constant 3.200000e+01 : f32
    %64 = vector.broadcast %cst_23 : f32 to vector<18x1xf32>
    %65 = arith.divf %63, %64 : vector<18x1xf32>
    %66 = vector.broadcast %58 : vector<18x1xf32> to vector<18x32xf32>
    %67 = arith.subf %52, %66 : vector<18x32xf32>
    %cst_24 = arith.constant 9.99999974E-6 : f32
    %68 = vector.broadcast %cst_24 : f32 to vector<18x1xf32>
    %69 = arith.addf %65, %68 : vector<18x1xf32>
    %70 = math.rsqrt %69 : vector<18x1xf32>
    %71 = vector.broadcast %70 : vector<18x1xf32> to vector<18x32xf32>
    %72 = arith.mulf %67, %71 : vector<18x32xf32>
    %73 = vector.broadcast %53 : vector<1x32xf32> to vector<18x32xf32>
    %74 = arith.mulf %72, %73 : vector<18x32xf32>
    %75 = vector.broadcast %54 : vector<1x32xf32> to vector<18x32xf32>
    %76 = arith.addf %74, %75 : vector<18x32xf32>
    %c1 = arith.constant 1 : index
    %c0_25 = arith.constant 0 : index
    %c0_26 = arith.constant 0 : index
    %77 = vector.load %arg3[%c1, %c0_25, %c0_26] : memref<2x32x32xf32, #tpu.memory_space<vmem>>, vector<1x32x32xf32>
    %78 = vector.shape_cast %77 : vector<1x32x32xf32> to vector<32x32xf32>
    %79 = arith.truncf %78 : vector<32x32xf32> to vector<32x32xbf16>
    %80 = arith.truncf %76 : vector<18x32xf32> to vector<18x32xbf16>
    %cst_27 = arith.constant dense<0.000000e+00> : vector<18x32xf32>
    %81 = tpu.matmul %80, %79, %cst_27 {dimension_numbers = #tpu.dot_dimension_numbers<[1], [0], [0], [1], [0, 0, 1, 1], [], []>} : vector<18x32xbf16>, vector<32x32xbf16>, vector<18x32xf32> -> vector<18x32xf32>
    %82 = vector.extract_strided_slice %1 {offsets = [3, 0], sizes = [1, 32], strides = [1, 1]} : vector<6x32xf32> to vector<1x32xf32>
    %83 = vector.broadcast %82 : vector<1x32xf32> to vector<18x32xf32>
    %84 = arith.addf %81, %83 : vector<18x32xf32>
    %85 = arith.addf %76, %84 : vector<18x32xf32>
    %86 = vector.extract_strided_slice %1 {offsets = [4, 0], sizes = [1, 32], strides = [1, 1]} : vector<6x32xf32> to vector<1x32xf32>
    %87 = vector.extract_strided_slice %1 {offsets = [5, 0], sizes = [1, 32], strides = [1, 1]} : vector<6x32xf32> to vector<1x32xf32>
    %cst_28 = arith.constant dense<0.000000e+00> : vector<18xf32>
    %88 = vector.multi_reduction <add>, %85, %cst_28 [1] : vector<18x32xf32> to vector<18xf32>
    %89 = vector.shape_cast %88 : vector<18xf32> to vector<18x1xf32>
    %cst_29 = arith.constant 3.200000e+01 : f32
    %90 = vector.broadcast %cst_29 : f32 to vector<18x1xf32>
    %91 = arith.divf %89, %90 : vector<18x1xf32>
    %92 = vector.broadcast %91 : vector<18x1xf32> to vector<18x32xf32>
    %93 = arith.subf %85, %92 : vector<18x32xf32>
    %94 = arith.mulf %93, %93 : vector<18x32xf32>
    %cst_30 = arith.constant dense<0.000000e+00> : vector<18xf32>
    %95 = vector.multi_reduction <add>, %94, %cst_30 [1] : vector<18x32xf32> to vector<18xf32>
    %96 = vector.shape_cast %95 : vector<18xf32> to vector<18x1xf32>
    %cst_31 = arith.constant 3.200000e+01 : f32
    %97 = vector.broadcast %cst_31 : f32 to vector<18x1xf32>
    %98 = arith.divf %96, %97 : vector<18x1xf32>
    %99 = vector.broadcast %91 : vector<18x1xf32> to vector<18x32xf32>
    %100 = arith.subf %85, %99 : vector<18x32xf32>
    %cst_32 = arith.constant 9.99999974E-6 : f32
    %101 = vector.broadcast %cst_32 : f32 to vector<18x1xf32>
    %102 = arith.addf %98, %101 : vector<18x1xf32>
    %103 = math.rsqrt %102 : vector<18x1xf32>
    %104 = vector.broadcast %103 : vector<18x1xf32> to vector<18x32xf32>
    %105 = arith.mulf %100, %104 : vector<18x32xf32>
    %106 = vector.broadcast %86 : vector<1x32xf32> to vector<18x32xf32>
    %107 = arith.mulf %105, %106 : vector<18x32xf32>
    %108 = vector.broadcast %87 : vector<1x32xf32> to vector<18x32xf32>
    %109 = arith.addf %107, %108 : vector<18x32xf32>
    %c0_33 = arith.constant 0 : index
    %c0_34 = arith.constant 0 : index
    %110 = vector.load %arg6[%c0_33, %c0_34] : memref<18x32xf32, #tpu.memory_space<vmem>>, vector<18x32xf32>
    tpu.vector_store %arg6[%c0_33, %c0_34], %109 {strides = array<i32>} : memref<18x32xf32, #tpu.memory_space<vmem>>, vector<18x32xf32>,
    return
  }
  func.func @transform_0(%arg0: i32) -> (i32, i32) {
    %c0_i32 = arith.constant 0 : i32
    %c0_i32_0 = arith.constant 0 : i32
    %c0_i32_1 = arith.constant 0 : i32
    return %c0_i32, %c0_i32_0 : i32, i32
  }
  func.func @transform_1(%arg0: i32) -> (i32, i32, i32) {
    %c0_i32 = arith.constant 0 : i32
    %c0_i32_0 = arith.constant 0 : i32
    %c0_i32_1 = arith.constant 0 : i32
    %c0_i32_2 = arith.constant 0 : i32
    return %c0_i32, %c0_i32_0, %c0_i32_1 : i32, i32, i32
  }
  func.func @transform_2(%arg0: i32) -> (i32, i32, i32) {
    %c0_i32 = arith.constant 0 : i32
    %c0_i32_0 = arith.constant 0 : i32
    %c0_i32_1 = arith.constant 0 : i32
    %c0_i32_2 = arith.constant 0 : i32
    return %c0_i32, %c0_i32_0, %c0_i32_1 : i32, i32, i32
  }
  func.func @transform_3(%arg0: i32) -> (i32, i32, i32) {
    %c0_i32 = arith.constant 0 : i32
    %c0_i32_0 = arith.constant 0 : i32
    %c0_i32_1 = arith.constant 0 : i32
    %c0_i32_2 = arith.constant 0 : i32
    return %c0_i32, %c0_i32_0, %c0_i32_1 : i32, i32, i32
  }
  func.func @transform_4(%arg0: i32) -> (i32, i32) {
    %c0_i32 = arith.constant 0 : i32
    %c0_i32_0 = arith.constant 0 : i32
    %c0_i32_1 = arith.constant 0 : i32
    return %c0_i32, %c0_i32_0 : i32, i32
  }
  func.func @transform_5(%arg0: i32) -> (i32, i32) {
    %c0_i32 = arith.constant 0 : i32
    %c0_i32_0 = arith.constant 0 : i32
    %c0_i32_1 = arith.constant 0 : i32
    return %c0_i32, %c0_i32_0 : i32, i32
  }
}

</mosaic_0001>

<bundles_post_ra>
// kernel: tpu_custom_call.1
= control target key start
LH: loop header
LB: loop body
LE: loop exit
PB: predicated region body
PF: predicated region fallthrough
CT: control target
= control target key end

     0   :  { %vm88_vm0 = vcmask 261120   ;;  %s2942_s0 = inlined_call_operand.vmem [shape: f32[18,32], index: 0, kind: input, shape index: {}]   ;;  %s2943_s1 = inlined_call_operand.vmem [shape: bf16[12,32,8], index: 1, kind: input, shape index: {}]   ;;  %s2944_s2 = inlined_call_operand.vmem [shape: f32[2,32,32], index: 2, kind: input, shape index: {}]   ;;  %s2945_s3 = inlined_call_operand.vmem [shape: f32[4,1,8], index: 3, kind: input, shape index: {}]   ;;  %s2946_s4 = inlined_call_operand.vmem [shape: f32[6,32], index: 4, kind: input, shape index: {}]   ;;  %s2947_s5 = inlined_call_operand.hbm [shape: f32[18,32], index: 5, kind: output, shape index: {}]  }
   0x1   :  { %v2360_v0 = vld [vmem:[%s2943_s1] sm:$0xff]   ;;  %v2361_v1 = vld [vmem:[%s2943_s1 + $0x10] sm:$0xff]   ;;  %v2362_v2 = vld [vmem:[%s2943_s1 + $0x8] sm:$0xff]  }
   0x2   :  { %2148 = vmatprep.subr.bf16.mxu0 %v2360_v0  ;;  %2156 = vmatprep.subr.bf16.mxu1 %v2361_v1  ;;  %v2363_v3 = vld [vmem:[%s2943_s1 + $0x18] sm:$0xff]   ;;  %v22_v4 = vld [vmem:[%s2942_s0] sm:$0xff]  ;;  %v23_v5 = vld [vmem:[%s2942_s0 + $0x8] sm:$0xff] }
   0x3   :  { %2149 = vmatpush3.bf16.msra.mxu0 %v2360_v0  ;;  %2157 = vmatpush3.bf16.msra.mxu1 %v2361_v1  ;;  %v24_v6 = vld [vmem:[%s2942_s0 + $0x10] sm:$0x3]  ;;  %v2526_v7 = vpack.c.bf16 %v23_v5, %v22_v4  ;;  %v2364_v8 = vld [vmem:[%s2943_s1 + $0x20] sm:$0xff]   ;;  %v2366_v11 = vld [vmem:[%s2943_s1 + $0x28] sm:$0xff]  }
   0x4   :  { %2150 = vmatprep.subr.bf16.mxu0 %v2362_v2  ;;  %2158 = vmatprep.subr.bf16.mxu1 %v2363_v3  ;;  %v2531_v9 = vpack.c.bf16 %v24_v6, %v24_v6  ;;  %v2365_v10 = vld [vmem:[%s2943_s1 + $0x30] sm:$0xff]   ;;  %v2367_v12 = vld [vmem:[%s2943_s1 + $0x38] sm:$0xff]   ;;  %v2368_v13 = vld [vmem:[%s2943_s1 + $0x40] sm:$0xff]  }
   0x5   :  { %2152 = vmatprep.mubr.msk.bf16.mxu0 %vm88_vm0, %v2526_v7  ;;  %2160 = vmatprep.mubr.msk.bf16.mxu1 %vm88_vm0, %v2526_v7  ;;  %v2369_v14 = vld [vmem:[%s2943_s1 + $0x50] sm:$0xff]   ;;  %v2370_v15 = vld [vmem:[%s2943_s1 + $0x48] sm:$0xff]   ;;  %v2371_v16 = vld [vmem:[%s2943_s1 + $0x58] sm:$0xff]  }
   0x6   :  { %v2372_v17 = vld [vmem:[%s2943_s1 + $0x60] sm:$0xff]   ;;  %v2373_v18 = vld [vmem:[%s2943_s1 + $0x70] sm:$0xff]   ;;  %v2374_v19 = vld [vmem:[%s2943_s1 + $0x68] sm:$0xff]  }
   0x7   :  { %2151 = vmatpush3.bf16.msra.mxu0 %v2362_v2  ;;  %2159 = vmatpush3.bf16.msra.mxu1 %v2363_v3 }
   0x8   :  { %2164 = vmatprep.subr.bf16.mxu0 %v2364_v8  ;;  %2172 = vmatprep.subr.bf16.mxu1 %v2365_v10 }
   0xa   :  { %2153 = vmatmul.mubr.msk.bf16.vlgmr.msra.gmra.mrb[0].mxu0 %vm88_vm0, %v2531_v9  ;;  %2161 = vmatmul.mubr.msk.bf16.vlgmr.msra.gmra.mrb[0].mxu1 %vm88_vm0, %v2531_v9 }
   0xb   :  { %2165 = vmatpush3.bf16.msra.mxu0 %v2364_v8  ;;  %2173 = vmatpush3.bf16.msra.mxu1 %v2365_v10 }
   0xc   :  { %2166 = vmatprep.subr.bf16.mxu0 %v2366_v11  ;;  %2174 = vmatprep.subr.bf16.mxu1 %v2367_v12 }
   0xd   :  { %2168 = vmatprep.mubr.msk.bf16.mxu0 %vm88_vm0, %v2526_v7  ;;  %2176 = vmatprep.mubr.msk.bf16.mxu1 %vm88_vm0, %v2526_v7 }
   0xf   :  { %2167 = vmatpush3.bf16.msra.mxu0 %v2366_v11  ;;  %2175 = vmatpush3.bf16.msra.mxu1 %v2367_v12 }
  0x10   :  { %2180 = vmatprep.subr.bf16.mxu0 %v2368_v13  ;;  %2188 = vmatprep.subr.bf16.mxu1 %v2369_v14 }
  0x12   :  { %2169 = vmatmul.mubr.msk.bf16.vlgmr.msra.gmra.mrb[4].mxu0 %vm88_vm0, %v2531_v9  ;;  %2177 = vmatmul.mubr.msk.bf16.vlgmr.msra.gmra.mrb[4].mxu1 %vm88_vm0, %v2531_v9 }
  0x13   :  { %2181 = vmatpush3.bf16.msra.mxu0 %v2368_v13  ;;  %2189 = vmatpush3.bf16.msra.mxu1 %v2369_v14 }
  0x14   :  { %2182 = vmatprep.subr.bf16.mxu0 %v2370_v15  ;;  %2190 = vmatprep.subr.bf16.mxu1 %v2371_v16 }
  0x15   :  { %2184 = vmatprep.mubr.msk.bf16.mxu0 %vm88_vm0, %v2526_v7  ;;  %2192 = vmatprep.mubr.msk.bf16.mxu1 %vm88_vm0, %v2526_v7 }
  0x17   :  { %2183 = vmatpush3.bf16.msra.mxu0 %v2370_v15  ;;  %2191 = vmatpush3.bf16.msra.mxu1 %v2371_v16 }
  0x18   :  { %2196 = vmatprep.subr.bf16.mxu0 %v2372_v17 }
  0x19   :  { %10 = vsyncpa [#allocation3], 0  ;;  %2204 = vmatprep.subr.bf16.mxu1 %v2373_v18  ;;  %v2375_v20 = vld [vmem:[%s2943_s1 + $0x78] sm:$0xff]   ;;  %v2376_v21 = vld [vmem:[%s2943_s1 + $0x80] sm:$0xff]   ;;  %vm877_vm1 = vcmask 64512   ;;  %vm1274_vm2 = vcmask 1040384  }
  0x1a   :  { %2185 = vmatmul.mubr.msk.bf16.vlgmr.msra.gmra.mrb[8].mxu0 %vm88_vm0, %v2531_v9  ;;  %2193 = vmatmul.mubr.msk.bf16.vlgmr.msra.gmra.mrb[8].mxu1 %vm88_vm0, %v2531_v9  ;;  %v2377_v22 = vld [vmem:[%s2943_s1 + $0x90] sm:$0xff]   ;;  %v2378_v23 = vld [vmem:[%s2943_s1 + $0x88] sm:$0xff]   ;;  %v2379_v24 = vld [vmem:[%s2943_s1 + $0x98] sm:$0xff]   ;;  %vm1125_vm6 = vcmask 140288   ;;  %vm1118_vm7 = vcmask 146432   ;;  %vm1519_vm8 = vcmask 1043456  }
  0x1b   :  { %2197 = vmatpush3.bf16.msra.mxu0 %v2372_v17  ;;  %2205 = vmatpush3.bf16.msra.mxu1 %v2373_v18  ;;  %v2380_v25 = vld [vmem:[%s2943_s1 + $0xa0] sm:$0xff]   ;;  %v2381_v26 = vld [vmem:[%s2943_s1 + $0xb0] sm:$0xff]   ;;  %v2382_v27 = vld [vmem:[%s2943_s1 + $0xa8] sm:$0xff]   ;;  %vm1756_vm9 = vcmask 254976  }
  0x1c   :  { %2198 = vmatprep.subr.bf16.mxu0 %v2374_v19  ;;  %2206 = vmatprep.subr.bf16.mxu1 %v2375_v20  ;;  %v2383_v28 = vld [vmem:[%s2943_s1 + $0xb8] sm:$0xff]   ;;  %v2643_v30 = vld [vmem:[%s2945_s3] ss:$0 sm:$0xff]  ;;  %v2650_v33 = vld [vmem:[%s2945_s3 + $0x1] ss:$0 sm:$0xff] }
  0x1d   :  { %2200 = vmatprep.mubr.msk.bf16.mxu0 %vm88_vm0, %v2526_v7  ;;  %2208 = vmatprep.mubr.msk.bf16.mxu1 %vm88_vm0, %v2526_v7  ;;  %v2662_v46 = vld [vmem:[%s2945_s3 + $0x2] ss:$0 sm:$0xff]  ;;  %v2670_v49 = vld [vmem:[%s2945_s3 + $0x3] ss:$0 sm:$0xff] }
  0x1f   :  { %2199 = vmatpush3.bf16.msra.mxu0 %v2374_v19  ;;  %2207 = vmatpush3.bf16.msra.mxu1 %v2375_v20 }
  0x20   :  { %2212 = vmatprep.subr.bf16.mxu0 %v2376_v21  ;;  %2220 = vmatprep.subr.bf16.mxu1 %v2377_v22 }
  0x22   :  { %2201 = vmatmul.mubr.msk.bf16.vlgmr.msra.gmra.mrb[12].mxu0 %vm88_vm0, %v2531_v9  ;;  %2209 = vmatmul.mubr.msk.bf16.vlgmr.msra.gmra.mrb[12].mxu1 %vm88_vm0, %v2531_v9 }
  0x23   :  { %2213 = vmatpush3.bf16.msra.mxu0 %v2376_v21  ;;  %2221 = vmatpush3.bf16.msra.mxu1 %v2377_v22 }
  0x24   :  { %2214 = vmatprep.subr.bf16.mxu0 %v2378_v23  ;;  %2222 = vmatprep.subr.bf16.mxu1 %v2379_v24 }
  0x25   :  { %2216 = vmatprep.mubr.msk.bf16.mxu0 %vm88_vm0, %v2526_v7  ;;  %2224 = vmatprep.mubr.msk.bf16.mxu1 %vm88_vm0, %v2526_v7 }
  0x27   :  { %2215 = vmatpush3.bf16.msra.mxu0 %v2378_v23  ;;  %2223 = vmatpush3.bf16.msra.mxu1 %v2379_v24 }
  0x28   :  { %2228 = vmatprep.subr.bf16.mxu0 %v2380_v25  ;;  %2236 = vmatprep.subr.bf16.mxu1 %v2381_v26 }
  0x2a   :  { %2217 = vmatmul.mubr.msk.bf16.vlgmr.msra.gmra.mrb[16].mxu0 %vm88_vm0, %v2531_v9  ;;  %2225 = vmatmul.mubr.msk.bf16.vlgmr.msra.gmra.mrb[16].mxu1 %vm88_vm0, %v2531_v9 }
  0x2b   :  { %2229 = vmatpush3.bf16.msra.mxu0 %v2380_v25  ;;  %2237 = vmatpush3.bf16.msra.mxu1 %v2381_v26 }
  0x2c   :  { %2232 = vmatprep.mubr.msk.bf16.mxu0 %vm88_vm0, %v2526_v7  ;;  %2240 = vmatprep.mubr.msk.bf16.mxu1 %vm88_vm0, %v2526_v7 }
  0x2d   :  { %2230 = vmatprep.subr.bf16.mxu0 %v2382_v27  ;;  %2238 = vmatprep.subr.bf16.mxu1 %v2383_v28 }
  0x2f   :  { %2231 = vmatpush3.bf16.msra.mxu0 %v2382_v27  ;;  %2239 = vmatpush3.bf16.msra.mxu1 %v2383_v28 }
  0x32   :  { %2233 = vmatmul.mubr.msk.bf16.vlgmr.msra.gmra.mrb[20].mxu0 %vm88_vm0, %v2531_v9  ;;  %2241 = vmatmul.mubr.msk.bf16.vlgmr.msra.gmra.mrb[20].mxu1 %vm88_vm0, %v2531_v9 }
  0xdd   :  { %v2638_v29 = vpop.f32.mrb[0].mxu0  ;;  %v2645_v31 = vpop.f32.mrb[0].mxu1 }
  0xde   :  { %v129_v32 = vpop.f32.mrb[1].mxu0  ;;  %v189_v34 = vpop.f32.mrb[1].mxu1  ;;  %v833_v23 = vadd.f32 %v2638_v29, %v2643_v30  ;;  %v836_v25 = vadd.f32 %v2645_v31, %v2650_v33 }
  0xdf   :  { %v2155_v35 = vpop.f32.mrb[2].mxu0  ;;  %v2163_v36 = vpop.f32.mrb[2].mxu1  ;;  %v831_v38 = vadd.f32 %v2643_v30, %v129_v32  ;;  %v834_v41 = vadd.f32 %v2650_v33, %v189_v34 }
  0xe0   :  { %v132_v37 = vpop.f32.mrb[3].mxu0  ;;  %v192_v40 = vpop.f32.mrb[3].mxu1  ;;  %v844_v36 = vpack.c.bf16 %v833_v23, %v833_v23 }
  0xe1   :  { %v832_v39 = vadd.f32 %v2643_v30, %v132_v37  ;;  %v835_v42 = vadd.f32 %v2650_v33, %v192_v40 }
  0xe3   :  { %v843_v43 = vpack.c.bf16 %v832_v39, %v831_v38  ;;  %v845_v44 = vpack.c.bf16 %v835_v42, %v834_v41  ;;  %v846_v39 = vpack.c.bf16 %v836_v25, %v836_v25 }
  0xe5   :  { %v2656_v45 = vpop.f32.mrb[4].mxu0  ;;  %2248 = vmatprep.mubr.msk.bf16.mxu0 %vm877_vm1, %v843_v43  ;;  %v2664_v47 = vpop.f32.mrb[4].mxu1  ;;  %2256 = vmatprep.mubr.msk.bf16.mxu1 %vm877_vm1, %v845_v44 }
  0xe6   :  { %v249_v48 = vpop.f32.mrb[5].mxu0  ;;  %v309_v50 = vpop.f32.mrb[5].mxu1  ;;  %v839_v43 = vadd.f32 %v2656_v45, %v2662_v46  ;;  %v842_v44 = vadd.f32 %v2664_v47, %v2670_v49 }
  0xe7   :  { %v2171_v51 = vpop.f32.mrb[6].mxu0  ;;  %v2179_v52 = vpop.f32.mrb[6].mxu1  ;;  %v2673_v54 = vadd.f32 %v2662_v46, %v249_v48  ;;  %v2679_v57 = vadd.f32 %v2670_v49, %v309_v50 }
  0xe8   :  { %v252_v53 = vpop.f32.mrb[7].mxu0  ;;  %v312_v56 = vpop.f32.mrb[7].mxu1  ;;  %v848_v48 = vpack.c.bf16 %v839_v43, %v839_v43  ;;  %v850_v51 = vpack.c.bf16 %v842_v44, %v842_v44 }
  0xe9   :  { %v2676_v55 = vadd.f32 %v2662_v46, %v252_v53  ;;  %v2682_v58 = vadd.f32 %v2670_v49, %v312_v56 }
  0xeb   :  { %v847_v59 = vpack.c.bf16 %v2676_v55, %v2673_v54  ;;  %v849_v60 = vpack.c.bf16 %v2682_v58, %v2679_v57 }
  0xed   :  { %v2186_v61 = vpop.f32.mrb[8].mxu0  ;;  %v2194_v62 = vpop.f32.mrb[8].mxu1 }
  0xee   :  { %v369_v63 = vpop.f32.mrb[9].mxu0  ;;  %v429_v0 = vpop.f32.mrb[9].mxu1  ;;  %v852_v7 = vpack.c.bf16 %v2186_v61, %v2186_v61  ;;  %v854_v9 = vpack.c.bf16 %v2194_v62, %v2194_v62  ;;  %v859_v61 = vlaneseq }
  0xef   :  { %v2187_v1 = vpop.f32.mrb[10].mxu0  ;;  %v2195_v2 = vpop.f32.mrb[10].mxu1 }
  0xf0   :  { %v372_v3 = vpop.f32.mrb[11].mxu0  ;;  %v432_v5 = vpop.f32.mrb[11].mxu1  ;;  %v888_v21 = vsel %vm877_vm1, %v852_v7, 0  ;;  %v948_v22 = vsel %vm877_vm1, %v854_v9, 0  ;;  %v2732_v62 = vshrl.u32 %v859_v61, 7 }
  0xf1   :  { %v851_v4 = vpack.c.bf16 %v372_v3, %v369_v63  ;;  %v853_v6 = vpack.c.bf16 %v432_v5, %v429_v0  ;;  %v864_v0 = vand.u32 127, %v859_v61 }
  0xf2   :  { %v862_v63 = vadd.s32 16, %v2732_v62  ;;  %v861_v1 = vadd.s32 8, %v2732_v62 }
  0xf3   :  { %v885_v8 = vsel %vm877_vm1, %v851_v4, 0  ;;  %2340 = vmatprep.subr.msk.bf16.mxu0 %vm877_vm1, %v851_v4  ;;  %v945_v10 = vsel %vm877_vm1, %v853_v6, 0  ;;  %2342 = vmatprep.subr.msk.bf16.mxu1 %vm877_vm1, %v853_v6  ;;  %v865_v3 = vxor.u32 %v864_v0, %v2732_v62 }
  0xf4   :  { %2245 = vmatpush3.bf16.xpose.msra.mxu0 %v885_v8  ;;  %2253 = vmatpush3.bf16.xpose.msra.mxu1 %v945_v10  ;;  %v867_v2 = vxor.u32 %v864_v0, %v862_v63  ;;  %v866_v4 = vxor.u32 %v864_v0, %v861_v1  ;;  %v2471_v8 = vmov -1e+30  }
  0xf5   :  { %2341 = vmatprep.subr.msk.bf16.mxu0 %vm877_vm1, %v852_v7  ;;  %v2202_v11 = vpop.f32.mrb[12].mxu0  ;;  %2343 = vmatprep.subr.msk.bf16.mxu1 %vm877_vm1, %v854_v9  ;;  %v2210_v12 = vpop.f32.mrb[12].mxu1  ;;  %v868_v6 = vand.u32 1, %v865_v3 }
  0xf6   :  { %v489_v13 = vpop.f32.mrb[13].mxu0  ;;  %v549_v14 = vpop.f32.mrb[13].mxu1  ;;  %v856_v40 = vpack.c.bf16 %v2202_v11, %v2202_v11  ;;  %v858_v33 = vpack.c.bf16 %v2210_v12, %v2210_v12  ;;  %v870_v5 = vand.u32 1, %v867_v2  ;;  %v869_v7 = vand.u32 1, %v866_v4 }
  0xf7   :  { %v2203_v15 = vpop.f32.mrb[14].mxu0  ;;  %v2211_v16 = vpop.f32.mrb[14].mxu1  ;;  %vm871_vm4 = vcmp.eq.s32.totalorder %v868_v6, 0 }
  0xf8   :  { %v492_v17 = vpop.f32.mrb[15].mxu0  ;;  %v552_v19 = vpop.f32.mrb[15].mxu1  ;;  %v1008_v41 = vsel %vm877_vm1, %v856_v40, 0  ;;  %v1068_v42 = vsel %vm877_vm1, %v858_v33, 0  ;;  %vm873_vm3 = vcmp.eq.s32.totalorder %v870_v5, 0  ;;  %vm872_vm5 = vcmp.eq.s32.totalorder %v869_v7, 0 }
  0xf9   :  { %v855_v18 = vpack.c.bf16 %v492_v17, %v489_v13  ;;  %v857_v20 = vpack.c.bf16 %v552_v19, %v549_v14  ;;  %v876_v9 = vsel %vm873_vm3, 0.0, %v2471_v8  ;;  %v874_v10 = vsel %vm871_vm4, 0.0, %v2471_v8 }
  0xfa   :  { %v875_v15 = vsel %vm872_vm5, 0.0, %v2471_v8 }
  0xfb   :  { %v1005_v30 = vsel %vm877_vm1, %v855_v18, 0  ;;  %v1065_v31 = vsel %vm877_vm1, %v857_v20, 0 }
  0xfc   :  { %2247 = vmatpush3.bf16.xpose.msra.mxu0 %v888_v21  ;;  %2255 = vmatpush3.bf16.xpose.msra.mxu1 %v948_v22 }
  0xfd   :  { %2344 = vmatprep.subr.msk.bf16.mxu0 %vm877_vm1, %v855_v18  ;;  %v2218_v24 = vpop.f32.mrb[16].mxu0  ;;  %2346 = vmatprep.subr.msk.bf16.mxu1 %vm877_vm1, %v857_v20  ;;  %v2226_v26 = vpop.f32.mrb[16].mxu1 }
  0xfe   :  { %v609_v27 = vpop.f32.mrb[17].mxu0  ;;  %v669_v28 = vpop.f32.mrb[17].mxu1  ;;  %v1261_v50 = vpack.c.bf16 %v2218_v24, %v2218_v24  ;;  %v1263_v52 = vpack.c.bf16 %v2226_v26, %v2226_v26 }
  0xff   :  { %v2219_v32 = vpop.f32.mrb[18].mxu0  ;;  %v2227_v34 = vpop.f32.mrb[18].mxu1 }
 0x100   :  { %v612_v35 = vpop.f32.mrb[19].mxu0  ;;  %v672_v38 = vpop.f32.mrb[19].mxu1  ;;  %v1276_v53 = vsel %vm1274_vm2, %v1261_v50, 0  ;;  %v1333_v45 = vsel %vm1274_vm2, %v1263_v52, 0 }
 0x101   :  { %v1260_v37 = vpack.c.bf16 %v612_v35, %v609_v27  ;;  %v1262_v29 = vpack.c.bf16 %v672_v38, %v669_v28 }
 0x103   :  { %2249 = vmatmul.mubr.msk.bf16.vlgmr.msra.gmra.mrb[24].mxu0 %vm877_vm1, %v844_v36  ;;  %2257 = vmatmul.mubr.msk.bf16.vlgmr.msra.gmra.mrb[24].mxu1 %vm877_vm1, %v846_v39 }
 0x104   :  { %2261 = vmatpush3.bf16.xpose.msra.mxu0 %v1005_v30  ;;  %2264 = vmatprep.mubr.msk.bf16.mxu0 %vm877_vm1, %v847_v59 }
 0x105   :  { %2269 = vmatpush3.bf16.xpose.msra.mxu1 %v1065_v31  ;;  %2272 = vmatprep.mubr.msk.bf16.mxu1 %vm877_vm1, %v849_v60  ;;  %v2722_v46 = vpop.f32.mrb[20].mxu0  ;;  %v2724_v47 = vpop.f32.mrb[20].mxu1 }
 0x106   :  { %2345 = vmatprep.subr.msk.bf16.mxu0 %vm877_vm1, %v856_v40  ;;  %2347 = vmatprep.subr.msk.bf16.mxu1 %vm877_vm1, %v858_v33  ;;  %v729_v49 = vpop.f32.mrb[21].mxu0  ;;  %v789_v54 = vpop.f32.mrb[21].mxu1 }
 0x107   :  { %v2235_v55 = vpop.f32.mrb[22].mxu0  ;;  %v2243_v56 = vpop.f32.mrb[22].mxu1 }
 0x108   :  { %v732_v57 = vpop.f32.mrb[23].mxu0  ;;  %v792_v58 = vpop.f32.mrb[23].mxu1 }
 0x109   :  { %v2726_v59 = vpack.c.bf16 %v732_v57, %v729_v49  ;;  %v2728_v60 = vpack.c.bf16 %v792_v58, %v789_v54 }
 0x10c   :  { %2263 = vmatpush3.bf16.xpose.msra.mxu0 %v1008_v41 }
 0x10d   :  { %2271 = vmatpush3.bf16.xpose.msra.mxu1 %v1068_v42  ;;  %2276 = vmatprep.subr.bf16.mxu0 %v1260_v37 }
 0x10e   :  { %2284 = vmatprep.subr.bf16.mxu1 %v1262_v29 }
 0x113   :  { %2265 = vmatmul.mubr.msk.bf16.vlgmr.msra.gmra.mrb[28].mxu0 %vm877_vm1, %v848_v48 }
 0x114   :  { %2273 = vmatmul.mubr.msk.bf16.vlgmr.msra.gmra.mrb[28].mxu1 %vm877_vm1, %v850_v51  ;;  %2277 = vmatpush3.bf16.msra.mxu0 %v1260_v37 }
 0x115   :  { %2285 = vmatpush3.bf16.msra.mxu1 %v1262_v29  ;;  %2348 = vmatprep.subr.msk.bf16.mxu0 %vm1274_vm2, %v1261_v50 }
 0x116   :  { %2349 = vmatprep.subr.msk.bf16.mxu1 %vm1274_vm2, %v1263_v52 }
 0x118   :  { %2279 = vmatpush3.bf16.msra.mxu0 %v1276_v53 }
 0x119   :  { %2287 = vmatpush3.bf16.msra.mxu1 %v1333_v45  ;;  %2292 = vmatprep.subr.bf16.mxu0 %v2726_v59 }
 0x11a   :  { %2300 = vmatprep.subr.bf16.mxu1 %v2728_v60 }
 0x1d6   :  { %v2250_v11 = vpop.f32.mrb[24].mxu0  ;;  %v2258_v13 = vpop.f32.mrb[24].mxu1 }
 0x1d7   :  { %v933_v12 = vadd.f32 %v2250_v11, %v876_v9  ;;  %v924_v14 = vpop.f32.mrb[25].mxu0  ;;  %v984_v17 = vpop.f32.mrb[25].mxu1  ;;  %v993_v19 = vadd.f32 %v2258_v13, %v876_v9 }
 0x1d8   :  { %v925_v16 = vadd.f32 %v924_v14, %v874_v10  ;;  %v2251_v18 = vpop.f32.mrb[26].mxu0  ;;  %v2259_v20 = vpop.f32.mrb[26].mxu1  ;;  %v985_v26 = vadd.f32 %v984_v17, %v874_v10 }
 0x1d9   :  { %v927_v21 = vpop.f32.mrb[27].mxu0  ;;  %v1126_v22 = vsel %vm1125_vm6, %v933_v12, -inf  ;;  %v987_v24 = vpop.f32.mrb[27].mxu1  ;;  %v1135_v27 = vsel %vm1125_vm6, %v993_v19, -inf }
 0x1da   :  { %v928_v23 = vadd.f32 %v927_v21, %v875_v15  ;;  %1127 = vmax.xlane.f32.xlu1 %v1126_v22  ;;  %v1119_v25 = vsel %vm1118_vm7, %v925_v16, -inf  ;;  %v988_v28 = vadd.f32 %v987_v24, %v875_v15  ;;  %v1129_v34 = vsel %vm1118_vm7, %v985_v26, -inf }
 0x1db   :  { %1120 = vmax.xlane.f32.xlu0 %v1119_v25 }
 0x1dc   :  { %v1122_v32 = vsel %vm1118_vm7, %v928_v23, -inf  ;;  %v1132_v35 = vsel %vm1118_vm7, %v988_v28, -inf }
 0x1de   :  { %1136 = vmax.xlane.f32.xlu1 %v1135_v27 }
 0x1df   :  { %1123 = vmax.xlane.f32.xlu0 %v1122_v32 }
 0x1e2   :  { %1130 = vmax.xlane.f32.xlu1 %v1129_v34 }
 0x1e3   :  { %1133 = vmax.xlane.f32.xlu0 %v1132_v35 }
 0x1e6   :  { %v2266_v36 = vpop.f32.mrb[28].mxu0 }
 0x1e7   :  { %v1053_v37 = vadd.f32 %v2266_v36, %v876_v9  ;;  %v2274_v38 = vpop.f32.mrb[28].mxu1  ;;  %v1044_v39 = vpop.f32.mrb[29].mxu0 }
 0x1e8   :  { %v1104_v29 = vpop.f32.mrb[29].mxu1  ;;  %v2267_v30 = vpop.f32.mrb[30].mxu0  ;;  %v2743_v40 = vadd.f32 %v1044_v39, %v874_v10  ;;  %v2753_v52 = vadd.f32 %v2274_v38, %v876_v9 }
 0x1e9   :  { %v1105_v31 = vadd.f32 %v1104_v29, %v874_v10  ;;  %v2275_v33 = vpop.f32.mrb[30].mxu1  ;;  %v1047_v41 = vpop.f32.mrb[31].mxu0  ;;  %v1144_v42 = vsel %vm1125_vm6, %v1053_v37, -inf }
 0x1ea   :  { %v1107_v43 = vpop.f32.mrb[31].mxu1  ;;  %1145 = vmax.xlane.f32.xlu0 %v1144_v42  ;;  %v2746_v44 = vadd.f32 %v1047_v41, %v875_v15  ;;  %v1138_v51 = vsel %vm1118_vm7, %v2743_v40, -inf  ;;  %v1153_v49 = vsel %vm1125_vm6, %v2753_v52, -inf }
 0x1eb   :  { %v1147_v48 = vsel %vm1118_vm7, %v1105_v31, -inf  ;;  %v2749_v50 = vadd.f32 %v1107_v43, %v875_v15 }
 0x1ec   :  { %1148 = vmax.xlane.f32.xlu1 %v1147_v48  ;;  %v1141_v53 = vsel %vm1118_vm7, %v2746_v44, -inf }
 0x1ed   :  { %v1150_v45 = vsel %vm1118_vm7, %v2749_v50, -inf }
 0x1ee   :  { %1139 = vmax.xlane.f32.xlu0 %v1138_v51 }
 0x1f0   :  { %1142 = vmax.xlane.f32.xlu1 %v1141_v53 }
 0x1f2   :  { %1151 = vmax.xlane.f32.xlu0 %v1150_v45 }
 0x1f4   :  { %1154 = vmax.xlane.f32.xlu1 %v1153_v49 }
 0x267   :  { %v1128_v54 = vpop.xlane.xlu1 %1127 }
 0x268   :  { %v1158_v55 = vsub.f32 %v933_v12, %v1128_v54  ;;  %v1121_v56 = vpop.xlane.xlu0 %1120 }
 0x269   :  { %v1156_v57 = vsub.f32 %v925_v16, %v1121_v56 }
 0x26a   :  { %v1172_v58 = vmul.f32 1.442695, %v1158_v55 }
 0x26b   :  { %v1168_v61 = vmul.f32 1.442695, %v1156_v57  ;;  %v1137_v63 = vpop.xlane.xlu1 %1136 }
 0x26c   :  { %2384 = vpow2.f32 %v1172_v58  ;;  %v1161_v0 = vsub.f32 %v993_v19, %v1137_v63  ;;  %v1124_v1 = vpop.xlane.xlu0 %1123 }
 0x26d   :  { %2386 = vpow2.f32 %v1168_v61  ;;  %v1157_v3 = vsub.f32 %v928_v23, %v1124_v1 }
 0x26e   :  { %v1178_v2 = vmul.f32 1.442695, %v1161_v0 }
 0x26f   :  { %v1131_v4 = vpop.xlane.xlu1 %1130  ;;  %v1170_v8 = vmul.f32 1.442695, %v1157_v3 }
 0x270   :  { %2388 = vpow2.f32 %v1178_v2  ;;  %v1159_v5 = vsub.f32 %v985_v26, %v1131_v4  ;;  %v1134_v6 = vpop.xlane.xlu0 %1133 }
 0x271   :  { %v1160_v7 = vsub.f32 %v988_v28, %v1134_v6 }
 0x272   :  { %v1174_v9 = vmul.f32 1.442695, %v1159_v5 }
 0x273   :  { %v1176_v10 = vmul.f32 1.442695, %v1160_v7 }
 0x274   :  { %2390 = vpow2.f32 %v1174_v9 }
 0x275   :  { %2392 = vpow2.f32 %v1176_v10 }
 0x276   :  { %v2761_v11 = vpop.eup %2384  ;;  %2394 = vpow2.f32 %v1170_v8 }
 0x277   :  { %v1146_v12 = vpop.xlane.xlu0 %1145  ;;  %v1198_v13 = vsel %vm1125_vm6, %v2761_v11, 0.0  ;;  %v2765_v14 = vpop.eup %2386 }
 0x278   :  { %v1164_v15 = vsub.f32 %v1053_v37, %v1146_v12  ;;  %1199 = vadd.xlane.f32.xlu0 %v1198_v13  ;;  %v1192_v22 = vsel %vm1118_vm7, %v2765_v14, 0.0 }
 0x279   :  { %v1149_v16 = vpop.xlane.xlu1 %1148 }
 0x27a   :  { %v2767_v17 = vpop.eup %2388  ;;  %v1184_v18 = vmul.f32 1.442695, %v1164_v15  ;;  %v1165_v19 = vsub.f32 %v1105_v31, %v1149_v16 }
 0x27b   :  { %v1140_v20 = vpop.xlane.xlu0 %1139  ;;  %v1207_v21 = vsel %vm1125_vm6, %v2767_v17, 0.0 }
 0x27c   :  { %2396 = vpow2.f32 %v1184_v18  ;;  %v1186_v23 = vmul.f32 1.442695, %v1165_v19  ;;  %v1162_v24 = vsub.f32 %v2743_v40, %v1140_v20  ;;  %1208 = vadd.xlane.f32.xlu1 %v1207_v21  ;;  %1193 = vadd.xlane.f32.xlu0 %v1192_v22 }
 0x27d   :  { %v1143_v25 = vpop.xlane.xlu1 %1142 }
 0x27e   :  { %v2391_v26 = vpop.eup %2390  ;;  %2398 = vpow2.f32 %v1186_v23  ;;  %v1180_v27 = vmul.f32 1.442695, %v1162_v24  ;;  %v1163_v28 = vsub.f32 %v2746_v44, %v1143_v25 }
 0x27f   :  { %v2393_v32 = vpop.eup %2392  ;;  %v1152_v34 = vpop.xlane.xlu0 %1151  ;;  %v1201_v35 = vsel %vm1118_vm7, %v2391_v26, 0.0 }
 0x280   :  { %v2776_v36 = vpop.eup %2394  ;;  %2400 = vpow2.f32 %v1180_v27  ;;  %v1182_v37 = vmul.f32 1.442695, %v1163_v28  ;;  %v1166_v38 = vsub.f32 %v2749_v50, %v1152_v34  ;;  %1202 = vadd.xlane.f32.xlu1 %v1201_v35  ;;  %v1204_v39 = vsel %vm1118_vm7, %v2393_v32, 0.0 }
 0x281   :  { %v1155_v29 = vpop.xlane.xlu1 %1154  ;;  %1205 = vadd.xlane.f32.xlu0 %v1204_v39  ;;  %v1195_v31 = vsel %vm1118_vm7, %v2776_v36, 0.0 }
 0x282   :  { %2402 = vpow2.f32 %v1182_v37  ;;  %v1188_v30 = vmul.f32 1.442695, %v1166_v38  ;;  %v1167_v40 = vsub.f32 %v2753_v52, %v1155_v29 }
 0x284   :  { %2404 = vpow2.f32 %v1188_v30  ;;  %v1190_v33 = vmul.f32 1.442695, %v1167_v40  ;;  %1196 = vadd.xlane.f32.xlu1 %v1195_v31  ;;  %v1498_v40 = vld [vmem:[%s2944_s2 + $0x8] sm:$0xff] }
 0x285   :  { %v1502_v31 = vpack.c.bf16 %v1498_v40, %v1498_v40 }
 0x286   :  { %v2783_v41 = vpop.eup %2396  ;;  %2406 = vpow2.f32 %v1190_v33  ;;  %v1497_v33 = vld [vmem:[%s2944_s2] sm:$0xff] }
 0x287   :  { %v1216_v42 = vsel %vm1125_vm6, %v2783_v41, 0.0 }
 0x288   :  { %v2787_v43 = vpop.eup %2398  ;;  %1217 = vadd.xlane.f32.xlu0 %v1216_v42  ;;  %v1578_v42 = vsel %vm1519_vm8, %v1502_v31, 0 }
 0x289   :  { %v1219_v44 = vsel %vm1118_vm7, %v2787_v43, 0.0 }
 0x28a   :  { %v2791_v48 = vpop.eup %2400  ;;  %1220 = vadd.xlane.f32.xlu1 %v1219_v44  ;;  %v1499_v44 = vld [vmem:[%s2944_s2 + $0x10] sm:$0xff] }
 0x28b   :  { %v1210_v50 = vsel %vm1118_vm7, %v2791_v48, 0.0 }
 0x28c   :  { %v2795_v51 = vpop.eup %2402  ;;  %1211 = vadd.xlane.f32.xlu0 %v1210_v50  ;;  %v1500_v50 = vld [vmem:[%s2944_s2 + $0x18] sm:$0xff] }
 0x28d   :  { %v1213_v52 = vsel %vm1118_vm7, %v2795_v51, 0.0 }
 0x28e   :  { %v2799_v53 = vpop.eup %2404  ;;  %1214 = vadd.xlane.f32.xlu1 %v1213_v52 }
 0x28f   :  { %v1222_v45 = vsel %vm1118_vm7, %v2799_v53, 0.0 }
 0x290   :  { %v2803_v49 = vpop.eup %2406  ;;  %1223 = vadd.xlane.f32.xlu0 %v1222_v45 }
 0x291   :  { %v1225_v54 = vsel %vm1125_vm6, %v2803_v49, 0.0 }
 0x292   :  { %1226 = vadd.xlane.f32.xlu1 %v1225_v54 }
 0x305   :  { %v1200_v55 = vpop.xlane.xlu0 %1199 }
 0x309   :  { %v1209_v56 = vpop.xlane.xlu1 %1208  ;;  %v1194_v57 = vpop.xlane.xlu0 %1193 }
 0x30a   :  { %2408 = vrcp.f32 %v1209_v56 }
 0x30b   :  { %2410 = vrcp.f32 %v1200_v55 }
 0x30d   :  { %v1203_v58 = vpop.xlane.xlu1 %1202 }
 0x30e   :  { %2412 = vrcp.f32 %v1203_v58  ;;  %v1206_v61 = vpop.xlane.xlu0 %1205 }
 0x30f   :  { %2414 = vrcp.f32 %v1206_v61 }
 0x310   :  { %2416 = vrcp.f32 %v1194_v57 }
 0x311   :  { %v1197_v63 = vpop.xlane.xlu1 %1196 }
 0x312   :  { %2418 = vrcp.f32 %v1197_v63 }
 0x314   :  { %v2409_v1 = vpop.eup %2408 }
 0x315   :  { %v1218_v0 = vpop.xlane.xlu0 %1217  ;;  %v2411_v2 = vpop.eup %2410  ;;  %v1245_v6 = vmul.f32 %v2409_v1, %v2767_v17  ;;  %v1267_v17 = vpack.c.bf16 %v2724_v47, %v2724_v47 }
 0x316   :  { %2420 = vrcp.f32 %v1218_v0  ;;  %v1242_v15 = vmul.f32 %v2411_v2, %v2761_v11 }
 0x317   :  { %v1221_v3 = vpop.xlane.xlu1 %1220  ;;  %v1255_v19 = vpack.c.bf16 %v1245_v6, %v1245_v6  ;;  %v1447_v47 = vsel %vm1274_vm2, %v1267_v17, 0 }
 0x318   :  { %v2413_v4 = vpop.eup %2412  ;;  %v1253_v11 = vpack.c.bf16 %v1242_v15, %v1242_v15 }
 0x319   :  { %v2415_v5 = vpop.eup %2414  ;;  %v1212_v7 = vpop.xlane.xlu0 %1211  ;;  %v1243_v8 = vmul.f32 %v2413_v4, %v2391_v26 }
 0x31a   :  { %v2417_v9 = vpop.eup %2416  ;;  %2422 = vrcp.f32 %v1212_v7  ;;  %v1244_v10 = vmul.f32 %v2415_v5, %v2393_v32 }
 0x31b   :  { %2424 = vrcp.f32 %v1221_v3  ;;  %v1215_v12 = vpop.xlane.xlu1 %1214  ;;  %v1240_v20 = vmul.f32 %v2417_v9, %v2765_v14  ;;  %v1265_v14 = vpack.c.bf16 %v2722_v46, %v2722_v46 }
 0x31c   :  { %v2419_v13 = vpop.eup %2418  ;;  %2426 = vrcp.f32 %v1215_v12  ;;  %v1254_v16 = vpack.c.bf16 %v1244_v10, %v1243_v8 }
 0x31d   :  { %v1224_v18 = vpop.xlane.xlu0 %1223  ;;  %v1241_v21 = vmul.f32 %v2419_v13, %v2776_v36  ;;  %v1390_v28 = vsel %vm1274_vm2, %v1265_v14, 0 }
 0x31e   :  { %2428 = vrcp.f32 %v1224_v18  ;;  %2288 = vmatprep.mubr.msk.bf16.mxu1 %vm1118_vm7, %v1254_v16 }
 0x31f   :  { %v1227_v22 = vpop.xlane.xlu1 %1226  ;;  %2289 = vmatmul.mubr.msk.bf16.vlgmr.msra.gmra.mrb[32].mxu1 %vm1118_vm7, %v1255_v19  ;;  %v1252_v23 = vpack.c.bf16 %v1241_v21, %v1240_v20 }
 0x320   :  { %2430 = vrcp.f32 %v1227_v22  ;;  %2301 = vmatpush3.bf16.msra.mxu1 %v2728_v60  ;;  %v2421_v24 = vpop.eup %2420 }
 0x321   :  { %2351 = vmatprep.subr.msk.bf16.mxu1 %vm1274_vm2, %v1267_v17  ;;  %2280 = vmatprep.mubr.msk.bf16.mxu0 %vm1118_vm7, %v1252_v23  ;;  %v1248_v32 = vmul.f32 %v2421_v24, %v2783_v41  ;;  %v1501_v41 = vpack.c.bf16 %v1497_v33, %v1497_v33 }
 0x322   :  { %2281 = vmatmul.mubr.msk.bf16.vlgmr.msra.gmra.mrb[32].mxu0 %vm1118_vm7, %v1253_v11 }
 0x323   :  { %2293 = vmatpush3.bf16.msra.mxu0 %v2726_v59  ;;  %v1257_v38 = vpack.c.bf16 %v1248_v32, %v1248_v32 }
 0x324   :  { %v2423_v25 = vpop.eup %2422  ;;  %2350 = vmatprep.subr.msk.bf16.mxu0 %vm1274_vm2, %v1265_v14  ;;  %2303 = vmatpush3.bf16.msra.mxu1 %v1447_v47 }
 0x325   :  { %v2425_v60 = vpop.eup %2424  ;;  %v1246_v26 = vmul.f32 %v2423_v25, %v2791_v48  ;;  %2353 = vmatprep.subr.msk.bf16.mxu1 %vm1519_vm8, %v1502_v31  ;;  %v1503_v48 = vpack.c.bf16 %v1499_v44, %v1499_v44 }
 0x326   :  { %v2427_v27 = vpop.eup %2426  ;;  %v1249_v36 = vmul.f32 %v2425_v60, %v2787_v43  ;;  %v1521_v43 = vsel %vm1519_vm8, %v1501_v41, 0 }
 0x327   :  { %2295 = vmatpush3.bf16.msra.mxu0 %v1390_v28  ;;  %v1247_v46 = vmul.f32 %v2427_v27, %v2795_v51  ;;  %v1504_v51 = vpack.c.bf16 %v1500_v50, %v1500_v50  ;;  %v1635_v52 = vsel %vm1519_vm8, %v1503_v48, 0 }
 0x328   :  { %v2429_v34 = vpop.eup %2428  ;;  %2352 = vmatprep.subr.msk.bf16.mxu0 %vm1519_vm8, %v1501_v41 }
 0x329   :  { %v1256_v35 = vpack.c.bf16 %v1247_v46, %v1246_v26  ;;  %v1250_v59 = vmul.f32 %v2429_v34, %v2799_v53  ;;  %v1692_v53 = vsel %vm1519_vm8, %v1504_v51, 0  ;;  %v1766_v34 = vsub.s32 0, %v2732_v62 }
 0x32a   :  { %v2431_v37 = vpop.eup %2430 }
 0x32b   :  { %v1251_v39 = vmul.f32 %v2431_v37, %v2803_v49  ;;  %2296 = vmatprep.mubr.msk.bf16.mxu0 %vm1118_vm7, %v1256_v35  ;;  %v1258_v29 = vpack.c.bf16 %v1250_v59, %v1249_v36  ;;  %v2874_v59 = vld [vmem:[%s2946_s4] sm:$0x3f] }
 0x32c   :  { %2297 = vmatmul.mubr.msk.bf16.vlgmr.msra.gmra.mrb[36].mxu0 %vm1118_vm7, %v1257_v38  ;;  %v1767_v41 = vrot.slane %v2874_v59, %v1766_v34 }
 0x32d   :  { %2304 = vmatprep.mubr.msk.bf16.mxu1 %vm1118_vm7, %v1258_v29  ;;  %v1259_v30 = vpack.c.bf16 %v1251_v39, %v1251_v39  ;;  %2309 = vmatpush3.bf16.msra.mxu0 %v1521_v43 }
 0x32e   :  { %2354 = vmatprep.subr.msk.bf16.mxu0 %vm1519_vm8, %v1503_v48 }
 0x32f   :  { %2305 = vmatmul.mubr.msk.bf16.vlgmr.msra.gmra.mrb[36].mxu1 %vm1118_vm7, %v1259_v30 }
 0x330   :  { %2315 = vmatpush3.bf16.msra.mxu1 %v1578_v42 }
 0x331   :  { %2355 = vmatprep.subr.msk.bf16.mxu1 %vm1519_vm8, %v1504_v51 }
 0x3f2   :  { %v2290_v45 = vpop.f32.mrb[32].mxu1 }
 0x3f3   :  { %v1369_v49 = vpop.f32.mrb[33].mxu1  ;;  %v1508_v61 = vpack.c.bf16 %v2290_v45, %v2290_v45 }
 0x3f4   :  { %v2291_v54 = vpop.f32.mrb[34].mxu1 }
 0x3f5   :  { %v2282_v55 = vpop.f32.mrb[32].mxu0  ;;  %v1372_v56 = vpop.f32.mrb[35].mxu1 }
 0x3f6   :  { %v1507_v57 = vpack.c.bf16 %v1372_v56, %v1369_v49  ;;  %v1312_v58 = vpop.f32.mrb[33].mxu0  ;;  %v1506_v2 = vpack.c.bf16 %v2282_v55, %v2282_v55  ;;  %v2444_v56 = vld [vmem:[%s2942_s0] sm:$0xff] }
 0x3f7   :  { %v2283_v63 = vpop.f32.mrb[34].mxu0 }
 0x3f8   :  { %v1315_v0 = vpop.f32.mrb[35].mxu0  ;;  %2316 = vmatprep.mubr.msk.bf16.mxu1 %vm877_vm1, %v1507_v57 }
 0x3f9   :  { %v1505_v1 = vpack.c.bf16 %v1315_v0, %v1312_v58  ;;  %2317 = vmatmul.mubr.msk.bf16.vlgmr.msra.gmra.mrb[40].mxu1 %vm877_vm1, %v1508_v61  ;;  %v2445_v61 = vld [vmem:[%s2942_s0 + $0x8] sm:$0xff]  ;;  %v2446_v0 = vld [vmem:[%s2942_s0 + $0x10] sm:$0x3] }
 0x3fa   :  { %2327 = vmatpush3.bf16.msra.mxu1 %v1692_v53 }
 0x3fb   :  { %2310 = vmatprep.mubr.msk.bf16.mxu0 %vm877_vm1, %v1505_v1 }
 0x3fc   :  { %2311 = vmatmul.mubr.msk.bf16.vlgmr.msra.gmra.mrb[40].mxu0 %vm877_vm1, %v1506_v2 }
 0x3fd   :  { %2321 = vmatpush3.bf16.msra.mxu0 %v1635_v52 }
 0x3ff   :  { %v2298_v3 = vpop.f32.mrb[36].mxu0 }
 0x400   :  { %v1426_v4 = vpop.f32.mrb[37].mxu0  ;;  %v1510_v10 = vpack.c.bf16 %v2298_v3, %v2298_v3 }
 0x401   :  { %v2299_v5 = vpop.f32.mrb[38].mxu0 }
 0x402   :  { %v1429_v6 = vpop.f32.mrb[39].mxu0  ;;  %v2306_v7 = vpop.f32.mrb[36].mxu1 }
 0x403   :  { %v1509_v8 = vpack.c.bf16 %v1429_v6, %v1426_v4  ;;  %v1483_v9 = vpop.f32.mrb[37].mxu1  ;;  %v1512_v16 = vpack.c.bf16 %v2306_v7, %v2306_v7 }
 0x404   :  { %v2307_v12 = vpop.f32.mrb[38].mxu1 }
 0x405   :  { %v1486_v13 = vpop.f32.mrb[39].mxu1  ;;  %2322 = vmatprep.mubr.msk.bf16.mxu0 %vm877_vm1, %v1509_v8 }
 0x406   :  { %v1511_v15 = vpack.c.bf16 %v1486_v13, %v1483_v9  ;;  %2323 = vmatmul.mubr.msk.bf16.vlgmr.msra.gmra.mrb[44].mxu0 %vm877_vm1, %v1510_v10 }
 0x408   :  { %2328 = vmatprep.mubr.msk.bf16.mxu1 %vm877_vm1, %v1511_v15 }
 0x409   :  { %2329 = vmatmul.mubr.msk.bf16.vlgmr.msra.gmra.mrb[44].mxu1 %vm877_vm1, %v1512_v16 }
 0x4cc   :  { %v2318_v18 = vpop.f32.mrb[40].mxu1 }
 0x4cd   :  { %v1614_v19 = vpop.f32.mrb[41].mxu1  ;;  %v1758_v22 = vsel %vm1756_vm9, %v2318_v18, 0.0 }
 0x4ce   :  { %v2319_v20 = vpop.f32.mrb[42].mxu1  ;;  %v1743_v14 = vsel %vm88_vm0, %v1614_v19, 0.0 }
 0x4cf   :  { %v2312_v21 = vpop.f32.mrb[40].mxu0  ;;  %v1617_v17 = vpop.f32.mrb[43].mxu1 }
 0x4d0   :  { %v1757_v23 = vsel %vm1756_vm9, %v2312_v21, 0.0  ;;  %v1557_v11 = vpop.f32.mrb[41].mxu0  ;;  %v1750_v27 = vsel %vm88_vm0, %v1617_v17, 0.0  ;;  %v2046_v17 = vld [vmem:[%s2944_s2 + $0x20] sm:$0xff] }
 0x4d1   :  { %v1759_v24 = vadd.f32 %v1758_v22, %v1757_v23  ;;  %v1742_v47 = vsel %vm88_vm0, %v1557_v11, 0.0  ;;  %v2313_v25 = vpop.f32.mrb[42].mxu0  ;;  %v2047_v22 = vld [vmem:[%s2944_s2 + $0x28] sm:$0xff]  ;;  %v2048_v11 = vld [vmem:[%s2944_s2 + $0x30] sm:$0xff] }
 0x4d2   :  { %v1744_v60 = vadd.f32 %v1743_v14, %v1742_v47  ;;  %v1560_v26 = vpop.f32.mrb[43].mxu0  ;;  %v1833_v23 = vpack.c.bf16 %v2047_v22, %v2046_v17  ;;  %v2049_v14 = vld [vmem:[%s2944_s2 + $0x38] sm:$0xff]  ;;  %s2472_s2 = smov [#allocation2]  }
 0x4d3   :  { %v1749_v28 = vsel %vm88_vm0, %v1560_v26, 0.0  ;;  %s1959_s24 = sshll.u32 %s2472_s2, 4  ;;  %s1960_s24 = int_to_ptr.vmem [resolvable:$true] %s1959_s24 }
 0x4d4   :  { %v1751_v32 = vadd.f32 %v1750_v27, %v1749_v28  ;;  %2332 = vmatprep.subr.bf16.mxu0 %v1833_v23  ;;  %s2447_s25 = scalar_lea.vmem %s1960_s24, 384  ;;  %p2452_p1 = scmp.lt.s32.totalorder %s1960_s24, %s1960_s24 }
 0x4d5   :  { %2333 = vmatpush3.bf16.msra.mxu0 %v1833_v23  ;;  %p2448_p0 = scmp.ne.s32.totalorder %s1960_s24, %s2447_s25  ;;  %p2453_p2 = scmp.lt.s32.totalorder %s2447_s25, %s2447_s25 }
 0x4d7   :  { %p2454_p3 = por %p2453_p2, %p2452_p1 }
 0x4d9   :  { %v2324_v46 = vpop.f32.mrb[44].mxu0  ;;  %p2455_p4 = pnand %p2454_p3, %p2448_p0 }
 0x4da   :  { %v1760_v35 = vsel %vm1756_vm9, %v2324_v46, 0.0  ;;  %v1671_v36 = vpop.f32.mrb[45].mxu0 }
 0x4db   :  { %v1761_v37 = vadd.f32 %v1760_v35, %v1759_v24  ;;  %v1745_v38 = vsel %vm88_vm0, %v1671_v36, 0.0  ;;  %v2325_v39 = vpop.f32.mrb[46].mxu0  ;;  %v1834_v24 = vpack.c.bf16 %v2049_v14, %v2048_v11  ;;  %v1816_v35 = vsub.s32 1, %v2732_v62 }
 0x4dc   :  { %v1746_v29 = vadd.f32 %v1745_v38, %v1744_v60  ;;  %v1674_v30 = vpop.f32.mrb[47].mxu0  ;;  %v2330_v40 = vpop.f32.mrb[44].mxu1 }
 0x4dd   :  { %v1752_v31 = vsel %vm88_vm0, %v1674_v30, 0.0  ;;  %v1762_v33 = vsel %vm1756_vm9, %v2330_v40, 0.0  ;;  %v1728_v42 = vpop.f32.mrb[45].mxu1  ;;  %2334 = vmatprep.subr.bf16.mxu0 %v1834_v24  ;;  %v1817_v36 = vrot.slane %v2874_v59, %v1816_v35 }
 0x4de   :  { %v1753_v43 = vadd.f32 %v1752_v31, %v1751_v32  ;;  %v1763_v44 = vadd.f32 %v1762_v33, %v1761_v37  ;;  %v1747_v48 = vsel %vm88_vm0, %v1728_v42, 0.0  ;;  %v2331_v50 = vpop.f32.mrb[46].mxu1  ;;  %2335 = vmatpush3.bf16.msra.mxu0 %v1834_v24  ;;  %v1823_v37 = vsub.s32 2, %v2732_v62 }
 0x4df   :  { %v1748_v51 = vadd.f32 %v1747_v48, %v1746_v29  ;;  %v1731_v52 = vpop.f32.mrb[47].mxu1 }
 0x4e0   :  { %v1754_v53 = vsel %vm88_vm0, %v1731_v52, 0.0  ;;  %v1770_v45 = vadd.f32 %v1767_v41, %v1763_v44  ;;  %v1824_v31 = vrot.slane %v2874_v59, %v1823_v37 }
 0x4e1   :  { %v1768_v49 = vadd.f32 %v1767_v41, %v1748_v51  ;;  %v1755_v54 = vadd.f32 %v1754_v53, %v1753_v43  ;;  %v1839_v53 = vsub.s32 3, %v2732_v62 }
 0x4e2   :  { %v1773_v1 = vadd.f32 %v2446_v0, %v1770_v45 }
 0x4e3   :  { %v1769_v55 = vadd.f32 %v1767_v41, %v1755_v54  ;;  %v1771_v57 = vadd.f32 %v2444_v56, %v1768_v49  ;;  %v1840_v45 = vrot.slane %v2874_v59, %v1839_v53 }
 0x4e4   :  { %v1780_v3 = vsel %vm1756_vm9, %v1773_v1, 0.0 }
 0x4e5   :  { %v1774_v58 = vsel %vm88_vm0, %v1771_v57, 0.0  ;;  %v1772_v63 = vadd.f32 %v2445_v61, %v1769_v55 }
 0x4e6   :  { %1775 = vadd.xlane.f32.xlu0 %v1774_v58 }
 0x4e7   :  { %v1777_v2 = vsel %vm88_vm0, %v1772_v63, 0.0 }
 0x4e8   :  { %1778 = vadd.xlane.f32.xlu1 %v1777_v2 }
 0x4ea   :  { %1781 = vadd.xlane.f32.xlu0 %v1780_v3 }
 0x573   :  { %v1776_v4 = vpop.xlane.xlu0 %1775 }
 0x574   :  { %v1784_v5 = vmul.f32 0.03125, %v1776_v4 }
 0x575   :  { %v1779_v6 = vpop.xlane.xlu1 %1778 }
 0x576   :  { %v1787_v7 = vsub.f32 %v1771_v57, %v1784_v5  ;;  %v1785_v8 = vmul.f32 0.03125, %v1779_v6 }
 0x577   :  { %v1782_v9 = vpop.xlane.xlu0 %1781 }
 0x578   :  { %v1788_v10 = vsub.f32 %v1772_v63, %v1785_v8  ;;  %v1786_v12 = vmul.f32 0.03125, %v1782_v9  ;;  %v1790_v13 = vmul.f32 %v1787_v7, %v1787_v7 }
 0x57a   :  { %v1789_v15 = vsub.f32 %v1773_v1, %v1786_v12  ;;  %v1793_v16 = vsel %vm88_vm0, %v1790_v13, 0.0  ;;  %v1791_v18 = vmul.f32 %v1788_v10, %v1788_v10 }
 0x57b   :  { %1794 = vadd.xlane.f32.xlu1 %v1793_v16 }
 0x57c   :  { %v1796_v19 = vsel %vm88_vm0, %v1791_v18, 0.0  ;;  %v1792_v20 = vmul.f32 %v1789_v15, %v1789_v15 }
 0x57d   :  { %1797 = vadd.xlane.f32.xlu0 %v1796_v19 }
 0x57e   :  { %v1799_v21 = vsel %vm1756_vm9, %v1792_v20, 0.0 }
 0x57f   :  { %1800 = vadd.xlane.f32.xlu1 %v1799_v21 }
 0x608   :  { %v1795_v47 = vpop.xlane.xlu1 %1794 }
 0x609   :  { %v1802_v25 = vmul.f32 0.03125, %v1795_v47 }
 0x60a   :  { %v1798_v60 = vpop.xlane.xlu0 %1797 }
 0x60b   :  { %v1805_v26 = vadd.f32 1e-05, %v1802_v25  ;;  %v1803_v27 = vmul.f32 0.03125, %v1798_v60 }
 0x60c   :  { %v1801_v28 = vpop.xlane.xlu1 %1800 }
 0x60d   :  { %2432 = vrsqrt.f32 %v1805_v26  ;;  %v1806_v32 = vadd.f32 1e-05, %v1803_v27  ;;  %v1804_v46 = vmul.f32 0.03125, %v1801_v28  ;;  %v1939_v27 = vsub.s32 4, %v2732_v62 }
 0x60e   :  { %v1946_v28 = vsub.s32 5, %v2732_v62 }
 0x60f   :  { %2434 = vrsqrt.f32 %v1806_v32  ;;  %v1807_v34 = vadd.f32 1e-05, %v1804_v46  ;;  %v1940_v32 = vrot.slane %v2874_v59, %v1939_v27 }
 0x610   :  { %v1947_v35 = vrot.slane %v2874_v59, %v1946_v28 }
 0x611   :  { %2436 = vrsqrt.f32 %v1807_v34 }
 0x617   :  { %v2433_v38 = vpop.eup %2432 }
 0x618   :  { %v1811_v39 = vmul.f32 %v2433_v38, %v1787_v7 }
 0x619   :  { %v2435_v29 = vpop.eup %2434 }
 0x61a   :  { %v1812_v30 = vmul.f32 %v2435_v29, %v1788_v10  ;;  %v1818_v40 = vmul.f32 %v1817_v36, %v1811_v39 }
 0x61b   :  { %v2437_v33 = vpop.eup %2436 }
 0x61c   :  { %v1813_v41 = vmul.f32 %v2437_v33, %v1789_v15  ;;  %v1819_v42 = vmul.f32 %v1817_v36, %v1812_v30  ;;  %v1825_v44 = vadd.f32 %v1824_v31, %v1818_v40 }
 0x61e   :  { %v1820_v43 = vmul.f32 %v1817_v36, %v1813_v41  ;;  %v1826_v48 = vadd.f32 %v1824_v31, %v1819_v42 }
 0x620   :  { %v1835_v50 = vpack.c.bf16 %v1826_v48, %v1825_v44  ;;  %v1827_v51 = vadd.f32 %v1824_v31, %v1820_v43 }
 0x622   :  { %2336 = vmatprep.mubr.msk.bf16.mxu0 %vm88_vm0, %v1835_v50  ;;  %v1836_v52 = vpack.c.bf16 %v1827_v51, %v1827_v51 }
 0x624   :  { %2337 = vmatmul.mubr.msk.bf16.vlgmr.msra.gmra.mrb[48].mxu0 %vm88_vm0, %v1836_v52 }
 0x6f7   :  { %v2338_v49 = vpop.f32.mrb[48].mxu0 }
 0x6f8   :  { %v1881_v54 = vpop.f32.mrb[49].mxu0  ;;  %v1890_v55 = vadd.f32 %v2338_v49, %v1840_v45 }
 0x6f9   :  { %v1882_v56 = vadd.f32 %v1881_v54, %v1840_v45  ;;  %v2339_v57 = vpop.f32.mrb[50].mxu0 }
 0x6fa   :  { %v1884_v58 = vpop.f32.mrb[51].mxu0  ;;  %v1897_v2 = vadd.f32 %v1890_v55, %v1827_v51 }
 0x6fb   :  { %v1885_v61 = vadd.f32 %v1884_v58, %v1840_v45  ;;  %v1895_v63 = vadd.f32 %v1882_v56, %v1825_v44 }
 0x6fc   :  { %v1904_v4 = vsel %vm1756_vm9, %v1897_v2, 0.0 }
 0x6fd   :  { %v1898_v0 = vsel %vm88_vm0, %v1895_v63, 0.0  ;;  %v1896_v1 = vadd.f32 %v1885_v61, %v1826_v48 }
 0x6fe   :  { %1899 = vadd.xlane.f32.xlu0 %v1898_v0 }
 0x6ff   :  { %v1901_v3 = vsel %vm88_vm0, %v1896_v1, 0.0 }
 0x700   :  { %1902 = vadd.xlane.f32.xlu1 %v1901_v3 }
 0x702   :  { %1905 = vadd.xlane.f32.xlu0 %v1904_v4 }
 0x78b   :  { %v1900_v5 = vpop.xlane.xlu0 %1899 }
 0x78c   :  { %v1907_v6 = vmul.f32 0.03125, %v1900_v5 }
 0x78d   :  { %v1903_v7 = vpop.xlane.xlu1 %1902 }
 0x78e   :  { %v1910_v8 = vsub.f32 %v1895_v63, %v1907_v6  ;;  %v1908_v9 = vmul.f32 0.03125, %v1903_v7 }
 0x78f   :  { %v1906_v10 = vpop.xlane.xlu0 %1905 }
 0x790   :  { %v1911_v12 = vsub.f32 %v1896_v1, %v1908_v9  ;;  %v1909_v13 = vmul.f32 0.03125, %v1906_v10  ;;  %v1913_v15 = vmul.f32 %v1910_v8, %v1910_v8 }
 0x792   :  { %v1912_v16 = vsub.f32 %v1897_v2, %v1909_v13  ;;  %v1916_v18 = vsel %vm88_vm0, %v1913_v15, 0.0  ;;  %v1914_v19 = vmul.f32 %v1911_v12, %v1911_v12 }
 0x793   :  { %1917 = vadd.xlane.f32.xlu1 %v1916_v18 }
 0x794   :  { %v1919_v20 = vsel %vm88_vm0, %v1914_v19, 0.0  ;;  %v1915_v21 = vmul.f32 %v1912_v16, %v1912_v16 }
 0x795   :  { %1920 = vadd.xlane.f32.xlu0 %v1919_v20 }
 0x796   :  { %v1922_v17 = vsel %vm1756_vm9, %v1915_v21, 0.0 }
 0x797   :  { %1923 = vadd.xlane.f32.xlu1 %v1922_v17 }
 0x820   :  { %v1918_v22 = vpop.xlane.xlu1 %1917 }
 0x821   :  { %v1925_v23 = vmul.f32 0.03125, %v1918_v22 }
 0x822   :  { %v1921_v11 = vpop.xlane.xlu0 %1920 }
 0x823   :  { %v1928_v14 = vadd.f32 1e-05, %v1925_v23  ;;  %v1926_v24 = vmul.f32 0.03125, %v1921_v11 }
 0x824   :  { %v1924_v47 = vpop.xlane.xlu1 %1923 }
 0x825   :  { %2438 = vrsqrt.f32 %v1928_v14  ;;  %v1929_v25 = vadd.f32 1e-05, %v1926_v24  ;;  %v1927_v60 = vmul.f32 0.03125, %v1924_v47 }
 0x827   :  { %2440 = vrsqrt.f32 %v1929_v25  ;;  %v1930_v26 = vadd.f32 1e-05, %v1927_v60 }
 0x829   :  { %2442 = vrsqrt.f32 %v1930_v26 }
 0x82f   :  { %v2439_v46 = vpop.eup %2438 }
 0x830   :  { %v1934_v34 = vmul.f32 %v2439_v46, %v1910_v8 }
 0x831   :  { %v2441_v36 = vpop.eup %2440 }
 0x832   :  { %v1941_v37 = vmul.f32 %v1940_v32, %v1934_v34  ;;  %v1935_v38 = vmul.f32 %v2441_v36, %v1911_v12 }
 0x833   :  { %v2443_v39 = vpop.eup %2442 }
 0x834   :  { %v1942_v29 = vmul.f32 %v1940_v32, %v1935_v38  ;;  %v1936_v30 = vmul.f32 %v2443_v39, %v1912_v16  ;;  %v1948_v40 = vadd.f32 %v1947_v35, %v1941_v37 }
 0x836   :  { %v1943_v31 = vmul.f32 %v1940_v32, %v1936_v30  ;;  %v1949_v33 = vadd.f32 %v1947_v35, %v1942_v29  ;;  %1951 = vst.msk [vmem:[#allocation2] sm:$0xff] %vm88_vm0, %v1948_v40 }
 0x838   :  { %v1950_v62 = vadd.f32 %v1947_v35, %v1943_v31  ;;  %1952 = vst.msk [vmem:[#allocation2 + $0x8] sm:$0xff] %vm88_vm0, %v1949_v33 }
 0x83a   :  { %1953 = vst.msk [vmem:[#allocation2 + $0x10] sm:$0x3] %vm1756_vm9, %v1950_v62 }
 0x83b   :  { %2458 = shalt.err (!%p2455_p4)
}
 0x83c   :  { %s2459_s28 = scalar_lea.hbm %s2947_s5, 384 }
 0x83d   :  { %p2460_p5 = scmp.ne.s32.totalorder %s2947_s5, %s2459_s28  ;;  %p2463_p6 = scmp.lt.u32.totalorder %s2459_s28, %s2947_s5 }
 0x83f   :  { %p2465_p7 = pnand %p2463_p6, %p2460_p5 }
 0x841   :  { %2468 = shalt.err (!%p2465_p7)
}
 0x842   :  { %s2473_s7 = smov 128   ;;  %s2474_s8 = smov 8  }
 0x843   :  { %1965 = dma.vmem_to_hbm [thread:$0]  %s1960_s24, 384, %s2947_s5, [#allocation3], %s2473_s7, %s2473_s7, %s2474_s8  }
 0x844   :  { %2469 = dma.done.wait [#allocation3], 384  }
 0x845   :  { %2470 = vsyncadd [#allocation3], 4294966912 }
 0x846   :  { %1969 = vsyncpa [#allocation3], 1 }

</bundles_post_ra>
